<compile_context>
chip_gen: v6e
topology: v6e:2x2x1
jax: 0.10.0
libtpu: 0.0.40
codegen_flags: <defaults>
</compile_context>

<pallas_src>
import functools
import math

import jax
import jax.numpy as jnp
from jax.experimental import pallas as pl
from jax.experimental.pallas import tpu as pltpu

LOG2PI = math.log(2.0 * math.pi)

# VMEM byte budget for the 2 inputs x 2 pipeline buffers of one grid step.
_VMEM_INPUT_BUDGET = 16 * 1024 * 1024
# Target HBM bytes read per grid step (amortizes per-step overhead).
_TARGET_STEP_BYTES = 4 * 1024 * 1024


def _round_up(n: int, m: int) -> int:
    return ((n + m - 1) // m) * m


def _make_nll_kernel(g: int, C: int):
    """Kernel over a (pack_tile, g*C) block of packed rows.

    Packed row j holds original rows j*g .. j*g+g-1, one per C-lane segment.
    Output block is (g, pack_tile), lane-dense: out[s, j] = nll(row j*g + s).
    """
    L = g * C
    seg_rows = max(g, 8)          # keep the MXU "M" dim at least one sublane tile
    const = 0.5 * C * LOG2PI      # hoisted constant term

    def kernel(x_ref, mu_ref, o_ref):
        x = x_ref[...].astype(jnp.float32)
        mu = mu_ref[...].astype(jnp.float32)
        d = x - mu
        sq = d * d                                            # (pack_tile, L) f32

        # 0/1 segment-selection matrix: seg[s, l] = 1 iff lane l belongs to slot s.
        lane = jax.lax.broadcasted_iota(jnp.int32, (seg_rows, L), 1)
        slot = jax.lax.broadcasted_iota(jnp.int32, (seg_rows, L), 0)
        seg = ((lane >= slot * C) & (lane < (slot + 1) * C)).astype(jnp.float32)

        # NT matmul on the MXU: (seg_rows, L) x (pack_tile, L)^T -> (seg_rows, pack_tile)
        # rowsum[s, j] = sum over channels of packed row j, slot s  (lane-dense).
        rowsum = jax.lax.dot_general(
            seg, sq,
            dimension_numbers=(((1,), (1,)), ((), ())),
            precision=jax.lax.Precision.HIGHEST,
            preferred_element_type=jnp.float32,
        )
        o_ref[...] = 0.5 * rowsum[0:g, :] + const

    return kernel


@functools.partial(jax.jit, static_argnames=("row_tile",))
def standard_normal_nll(x, params, row_tile=None):
    """Negative log-likelihood of x under N(params, 1), summed over channels.

    Args:
      x:      [batch, time, channel]  (float32 or bfloat16)
      params: [batch, time, channel]  (the means)
      row_tile: optional tuning knob -- rows of (batch*time) per grid step;
        auto-derived (and VMEM-clamped) when None.
    Returns:
      [batch, time] float32 negative log-likelihood.
    """
    B, T, C = x.shape
    if params.shape != x.shape:
        raise ValueError(f"params shape {params.shape} != x shape {x.shape}")
    rows = B * T
    itemsize = max(jnp.dtype(x.dtype).itemsize, jnp.dtype(params.dtype).itemsize)

    # ---- lane packing: g consecutive rows per (g*C)-lane packed row ----------
    g = 128 // math.gcd(C, 128)
    if g > 1:
        min_block_bytes = 4 * (128 * g) * C * itemsize
        if g > 32 or rows % g != 0 or min_block_bytes > _VMEM_INPUT_BUDGET:
            g = 1                      # un-packed fallback (always valid)
    L = g * C
    n_pack = rows // g

    # ---- row tile (counted in original rows) ---------------------------------
    row_align = 128 * g                # output block must be 128-lane aligned
    if row_tile is None:
        row_tile = _TARGET_STEP_BYTES // (2 * C * itemsize)
    row_tile = min(row_tile,
                   _VMEM_INPUT_BUDGET // (4 * C * itemsize),
                   _round_up(rows, row_align))
    row_tile = max(row_align, (row_tile // row_align) * row_align)
    pack_tile = row_tile // g

    grid = pl.cdiv(n_pack, pack_tile)
    out_cols = grid * pack_tile

    # Free contiguous reshapes (no data movement): [B,T,C] -> [n_pack, g*C].
    xp = x.reshape(n_pack, L)
    pp = params.reshape(n_pack, L)

    out = pl.pallas_call(
        _make_nll_kernel(g, C),
        out_shape=jax.ShapeDtypeStruct((g, out_cols), jnp.float32),
        grid_spec=pl.GridSpec(
            grid=(grid,),
            in_specs=[
                pl.BlockSpec((pack_tile, L), lambda i: (i, 0)),
                pl.BlockSpec((pack_tile, L), lambda i: (i, 0)),
            ],
            out_specs=pl.BlockSpec((g, pack_tile), lambda i: (0, i)),
        ),
        compiler_params=pltpu.CompilerParams(
            dimension_semantics=("parallel",),
            vmem_limit_bytes=32 * 1024 * 1024,
        ),
    )(xp, pp)

    # out[s, j] is the NLL of original row j*g + s; restore row-major order.
    nll_flat = out.T.reshape(-1)[:rows]
    return nll_flat.reshape(B, T)


if __name__ == "__main__":
    key = jax.random.PRNGKey(0)
    k1, k2, k3, k4 = jax.random.split(key, 4)

    def ref_nll(x, params):
        xf = x.astype(jnp.float32)
        pf = params.astype(jnp.float32)
        return (0.5 * ((xf - pf) ** 2 + LOG2PI)).sum(-1)

    # Case 1: packed fast path (C=32 -> 4 rows per 128-lane row), multi-step grid.
    B, T, C = 2, 1024, 32
    x = jax.random.normal(k1, (B, T, C), dtype=jnp.float32)
    p = jax.random.normal(k2, (B, T, C), dtype=jnp.float32)
    got = standard_normal_nll(x, p, row_tile=512)
    jax.block_until_ready(got)
    assert got.shape == (B, T)
    assert jnp.allclose(got, ref_nll(x, p), rtol=1e-5, atol=1e-3), "case 1 mismatch"

    # Case 1b: same data through the default (single large tile) configuration.
    got_def = standard_normal_nll(x, p)
    jax.block_until_ready(got_def)
    assert jnp.allclose(got_def, ref_nll(x, p), rtol=1e-5, atol=1e-3), "case 1b mismatch"

    # Case 2: ragged shapes (rows not a multiple of 128, non-pow2 C) exercises
    # the un-packed fallback and the overhanging (garbage-padded) last block.
    B2, T2, C2 = 3, 5, 24
    x2 = jax.random.normal(k3, (B2, T2, C2), dtype=jnp.float32)
    p2 = jax.random.normal(k4, (B2, T2, C2), dtype=jnp.float32)
    got2 = standard_normal_nll(x2, p2)
    jax.block_until_ready(got2)
    assert got2.shape == (B2, T2)
    assert jnp.allclose(got2, ref_nll(x2, p2), rtol=1e-5, atol=1e-3), "case 2 mismatch"

    # Case 3: bf16 ingestion (no wrapper-side upcast; kernel upcasts after load).
    xb = x.astype(jnp.bfloat16)
    pb = p.astype(jnp.bfloat16)
    got3 = standard_normal_nll(xb, pb)
    jax.block_until_ready(got3)
    assert jnp.allclose(got3, ref_nll(xb, pb), rtol=1e-5, atol=1e-3), "case 3 mismatch"

    print("KERNEL_OK")
</pallas_src>

<mosaic_0001>
module attributes {stable_mosaic.version = 11 : i64} {
  func.func @kernel(%arg0: i32, %arg1: memref<128x128xf32, #tpu.memory_space<vmem>>, %arg2: memref<128x128xf32, #tpu.memory_space<vmem>>, %arg3: memref<4x128xf32, #tpu.memory_space<vmem>>) attributes {dimension_semantics = [#tpu.dimension_semantics<parallel>], iteration_bounds = array<i64: 4>, scalar_prefetch = 0 : i64, scratch_operands = 0 : i64, tpu.core_type = #tpu.core_type<tc>, window_params = [{transform_indices = @transform_0, window_bounds = array<i64: 128, 128>}, {transform_indices = @transform_1, window_bounds = array<i64: 128, 128>}, {transform_indices = @transform_2, window_bounds = array<i64: 4, 128>}]} {
    %c0 = arith.constant 0 : index
    %c0_0 = arith.constant 0 : index
    %0 = vector.load %arg1[%c0, %c0_0] : memref<128x128xf32, #tpu.memory_space<vmem>>, vector<128x128xf32>
    %c0_1 = arith.constant 0 : index
    %c0_2 = arith.constant 0 : index
    %1 = vector.load %arg2[%c0_1, %c0_2] : memref<128x128xf32, #tpu.memory_space<vmem>>, vector<128x128xf32>
    %2 = arith.subf %0, %1 : vector<128x128xf32>
    %3 = arith.mulf %2, %2 : vector<128x128xf32>
    %4 = tpu.iota {dimensions = array<i32: 1>} : vector<8x128xi32>
    %5 = tpu.iota {dimensions = array<i32: 0>} : vector<8x128xi32>
    %c32_i32 = arith.constant 32 : i32
    %6 = vector.broadcast %c32_i32 : i32 to vector<8x128xi32>
    %7 = arith.muli %5, %6 : vector<8x128xi32>
    %8 = arith.cmpi sge, %4, %7 : vector<8x128xi32>
    %c1_i32 = arith.constant 1 : i32
    %9 = vector.broadcast %c1_i32 : i32 to vector<8x128xi32>
    %10 = arith.addi %5, %9 : vector<8x128xi32>
    %c32_i32_3 = arith.constant 32 : i32
    %11 = vector.broadcast %c32_i32_3 : i32 to vector<8x128xi32>
    %12 = arith.muli %10, %11 : vector<8x128xi32>
    %13 = arith.cmpi slt, %4, %12 : vector<8x128xi32>
    %14 = arith.andi %8, %13 : vector<8x128xi1>
    %15 = arith.extui %14 : vector<8x128xi1> to vector<8x128xi32>
    %16 = arith.sitofp %15 : vector<8x128xi32> to vector<8x128xf32>
    %cst = arith.constant dense<0.000000e+00> : vector<8x128xf32>
    %17 = tpu.matmul %16, %3, %cst {dimension_numbers = #tpu.dot_dimension_numbers<[1], [1], [0], [0], [0, 0, 1, 0], [], []>, precision = #tpu.contract_precision<fp32>} : vector<8x128xf32>, vector<128x128xf32>, vector<8x128xf32> -> vector<8x128xf32>
    %18 = vector.extract_strided_slice %17 {offsets = [0, 0], sizes = [4, 128], strides = [1, 1]} : vector<8x128xf32> to vector<4x128xf32>
    %cst_4 = arith.constant 5.000000e-01 : f32
    %19 = vector.broadcast %cst_4 : f32 to vector<4x128xf32>
    %20 = arith.mulf %19, %18 : vector<4x128xf32>
    %cst_5 = arith.constant 29.4060326 : f32
    %21 = vector.broadcast %cst_5 : f32 to vector<4x128xf32>
    %22 = arith.addf %20, %21 : vector<4x128xf32>
    %c0_6 = arith.constant 0 : index
    %c0_7 = arith.constant 0 : index
    %23 = vector.load %arg3[%c0_6, %c0_7] : memref<4x128xf32, #tpu.memory_space<vmem>>, vector<4x128xf32>
    tpu.vector_store %arg3[%c0_6, %c0_7], %22 {strides = array<i32>} : memref<4x128xf32, #tpu.memory_space<vmem>>, vector<4x128xf32>,
    return
  }
  func.func @transform_0(%arg0: i32) -> (i32, i32) {
    %c0_i32 = arith.constant 0 : i32
    %c0_i32_0 = arith.constant 0 : i32
    return %arg0, %c0_i32 : i32, i32
  }
  func.func @transform_1(%arg0: i32) -> (i32, i32) {
    %c0_i32 = arith.constant 0 : i32
    %c0_i32_0 = arith.constant 0 : i32
    return %arg0, %c0_i32 : i32, i32
  }
  func.func @transform_2(%arg0: i32) -> (i32, i32) {
    %c0_i32 = arith.constant 0 : i32
    %c0_i32_0 = arith.constant 0 : i32
    return %c0_i32, %arg0 : i32, i32
  }
}

</mosaic_0001>

<bundles_post_ra>
// kernel: standard_normal_nll.1
= control target key start
LH: loop header
LB: loop body
LE: loop exit
PB: predicated region body
PF: predicated region fallthrough
CT: control target
= control target key end

     0   :  { %s1316_s9 = smov 0   ;;  %s1750_s0 = inlined_call_operand.vmem [shape: f32[512,128], index: 0, kind: input, shape index: {}]   ;;  %s1751_s1 = inlined_call_operand.vmem [shape: f32[512,128], index: 1, kind: input, shape index: {}]   ;;  %s1752_s2 = inlined_call_operand.vmem [shape: f32[4,512], index: 2, kind: output, shape index: {}]  }
   0x1 LB: > { %s1322_s10 = sadd.s32 4294967295, %s1296_s9   ;;  %p955_p0 = scmp.ge.s32.totalorder %s1296_s9, 1  ;;  %s1296_s9 = sphi %s1316_s9, %s12_s9  }
   0x2   : > { %p124_p1 = scmp.lt.s32.totalorder %s1296_s9, 5 }
   0x4   : > { %p125_p2 = pnand %p955_p0, %p124_p1 }
   0x5   : > { %s956_s11 = sshll.u32 (!%p125_p2), %s1322_s10, 4  ;;  %p162_p4 = scmp.lt.s32.totalorder (!%p125_p2), %s1322_s10, 3 }
   0x6   : > { %128 = sbr.rel (%p125_p2) target bundleno = 421 (0x1a5), region = 28  ;;  %p151_p3 = scmp.lt.s32.totalorder (!%p125_p2), %s956_s11, 63 }
   0xb   : > { %v1298_v0 = vmov 0.0   ;;  %vm1299_vm0 = vmmov 0   ;;  %s1756_s11 = smov (!%p151_p3, %s956_s11), 63  ;;  %s1758_s10 = smov (!%p162_p4, %s1322_s10), 3 }
   0xc   : > { %1069 = vmatprep.subr.mxu0 %v1298_v0  ;;  %1104 = vmatprep.subr.mxu1 %v1298_v0  ;;  %s957_s12 = sshll.u32 %s1756_s11, 3  ;;  %s960_s19 = sshll.u32 %s1758_s10, 2 }
   0xd   : > { %1101 = vmatprep.mubr.msk.f32.mxu0 %vm1299_vm0, %v1298_v0  ;;  %1136 = vmatprep.mubr.msk.f32.mxu1 %vm1299_vm0, %v1298_v0  ;;  %s1336_s15 = scalar_lea.vmem %s1750_s0, %s957_s12  ;;  %s1341_s18 = scalar_lea.vmem %s1751_s1, %s957_s12 }
   0xe   : > { %v181_v1 = vld [vmem:[%s1336_s15 + $0x78] sm:$0xff]  ;;  %v180_v3 = vld [vmem:[%s1336_s15 + $0x70] sm:$0xff]  ;;  %v179_v6 = vld [vmem:[%s1336_s15 + $0x68] sm:$0xff]  ;;  %s165_s22 = scalar_lea.vmem %s1752_s2, %s960_s19 }
   0xf   : > { %v197_v2 = vld [vmem:[%s1341_s18 + $0x78] sm:$0xff]  ;;  %v196_v5 = vld [vmem:[%s1341_s18 + $0x70] sm:$0xff]  ;;  %v195_v7 = vld [vmem:[%s1341_s18 + $0x68] sm:$0xff] }
  0x10   : > { %v213_v4 = vsub.f32 %v181_v1, %v197_v2  ;;  %v212_v8 = vsub.f32 %v180_v3, %v196_v5  ;;  %v211_v9 = vsub.f32 %v179_v6, %v195_v7  ;;  %v178_v10 = vld [vmem:[%s1336_s15 + $0x60] sm:$0xff]  ;;  %v177_v12 = vld [vmem:[%s1336_s15 + $0x58] sm:$0xff]  ;;  %v176_v16 = vld [vmem:[%s1336_s15 + $0x50] sm:$0xff] }
  0x11   : > { %v194_v11 = vld [vmem:[%s1341_s18 + $0x60] sm:$0xff]  ;;  %v193_v15 = vld [vmem:[%s1341_s18 + $0x58] sm:$0xff]  ;;  %v192_v17 = vld [vmem:[%s1341_s18 + $0x50] sm:$0xff] }
  0x12   : > { %v229_v13 = vmul.f32 %v213_v4, %v213_v4  ;;  %v210_v14 = vsub.f32 %v178_v10, %v194_v11  ;;  %v228_v18 = vmul.f32 %v212_v8, %v212_v8  ;;  %v227_v19 = vmul.f32 %v211_v9, %v211_v9  ;;  %v175_v29 = vld [vmem:[%s1336_s15 + $0x48] sm:$0xff]  ;;  %v174_v41 = vld [vmem:[%s1336_s15 + $0x40] sm:$0xff]  ;;  %v173_v52 = vld [vmem:[%s1336_s15 + $0x38] sm:$0xff] }
  0x13   : > { %v209_v20 = vsub.f32 %v177_v12, %v193_v15  ;;  %v208_v25 = vsub.f32 %v176_v16, %v192_v17  ;;  %v191_v30 = vld [vmem:[%s1341_s18 + $0x48] sm:$0xff]  ;;  %v190_v42 = vld [vmem:[%s1341_s18 + $0x40] sm:$0xff]  ;;  %v189_v53 = vld [vmem:[%s1341_s18 + $0x38] sm:$0xff] }
  0x14   : > { %v1355_v21 = vand.u32 4294901760, %v229_v13  ;;  %v226_v22 = vmul.f32 %v210_v14, %v210_v14  ;;  %v1357_v23 = vand.u32 4294901760, %v228_v18  ;;  %v1359_v24 = vand.u32 4294901760, %v227_v19  ;;  %v172_v61 = vld [vmem:[%s1336_s15 + $0x30] sm:$0xff]  ;;  %v171_v7 = vld [vmem:[%s1336_s15 + $0x28] sm:$0xff]  ;;  %v170_v16 = vld [vmem:[%s1336_s15 + $0x20] sm:$0xff] }
  0x15   : > { %v225_v28 = vmul.f32 %v209_v20, %v209_v20  ;;  %v224_v35 = vmul.f32 %v208_v25, %v208_v25  ;;  %v207_v36 = vsub.f32 %v175_v29, %v191_v30  ;;  %v206_v47 = vsub.f32 %v174_v41, %v190_v42  ;;  %v188_v62 = vld [vmem:[%s1341_s18 + $0x30] sm:$0xff]  ;;  %v187_v8 = vld [vmem:[%s1341_s18 + $0x28] sm:$0xff]  ;;  %v186_v17 = vld [vmem:[%s1341_s18 + $0x20] sm:$0xff] }
  0x16   : > { %1070 = vmatpush3.xpose.msra.mxu0 %v1355_v21  ;;  %v1363_v26 = vsub.f32 %v229_v13, %v1355_v21  ;;  %v1365_v27 = vand.u32 4294901760, %v226_v22  ;;  %v1371_v31 = vsub.f32 %v228_v18, %v1357_v23  ;;  %v1374_v32 = vsub.f32 %v227_v19, %v1359_v24 }
  0x17   : > { %1071 = vmatprep.subr.mxu0 %v1298_v0  ;;  %v1382_v38 = vand.u32 4294901760, %v225_v28  ;;  %v1394_v45 = vand.u32 4294901760, %v224_v35  ;;  %v223_v46 = vmul.f32 %v207_v36, %v207_v36  ;;  %v205_v56 = vsub.f32 %v173_v52, %v189_v53  ;;  %v185_v36 = vld [vmem:[%s1341_s18 + $0x18] sm:$0xff]  ;;  %v184_v52 = vld [vmem:[%s1341_s18 + $0x10] sm:$0xff] }
  0x18   : > { %v336_v33 = vand.u32 4294901760, %v1363_v26  ;;  %v343_v34 = vand.u32 4294901760, %v1371_v31  ;;  %v350_v39 = vand.u32 4294901760, %v1374_v32  ;;  %v1386_v40 = vsub.f32 %v226_v22, %v1365_v27 }
  0x19   : > { %v1402_v51 = vsub.f32 %v225_v28, %v1382_v38  ;;  %v1408_v54 = vand.u32 4294901760, %v223_v46  ;;  %v1411_v55 = vsub.f32 %v224_v35, %v1394_v45  ;;  %v222_v60 = vmul.f32 %v206_v47, %v206_v47  ;;  %v169_v35 = vld [vmem:[%s1336_s15 + $0x18] sm:$0xff] }
  0x1a   : > { %1072 = vmatpush3.xpose.msra.mxu0 %v1357_v23  ;;  %v337_v37 = vsub.f32 %v1363_v26, %v336_v33  ;;  %v344_v43 = vsub.f32 %v1371_v31, %v343_v34  ;;  %v351_v49 = vsub.f32 %v1374_v32, %v350_v39  ;;  %v357_v50 = vand.u32 4294901760, %v1386_v40 }
  0x1b   : > { %1073 = vmatprep.subr.mxu0 %v1298_v0  ;;  %v364_v59 = vand.u32 4294901760, %v1402_v51  ;;  %v371_v63 = vand.u32 4294901760, %v1411_v55  ;;  %v221_v1 = vmul.f32 %v205_v56, %v205_v56  ;;  %v1424_v2 = vsub.f32 %v223_v46, %v1408_v54 }
  0x1c   : > { %v338_v44 = vand.u32 4294901760, %v337_v37  ;;  %v345_v48 = vand.u32 4294901760, %v344_v43  ;;  %v352_v57 = vand.u32 4294901760, %v351_v49  ;;  %v358_v58 = vsub.f32 %v1386_v40, %v357_v50  ;;  %v168_v49 = vld [vmem:[%s1336_s15 + $0x10] sm:$0xff] }
  0x1d   : > { %v365_v4 = vsub.f32 %v1402_v51, %v364_v59  ;;  %v1430_v5 = vand.u32 4294901760, %v222_v60  ;;  %v204_v6 = vsub.f32 %v172_v61, %v188_v62  ;;  %v372_v9 = vsub.f32 %v1411_v55, %v371_v63 }
  0x1e   : > { %1074 = vmatpush3.xpose.msra.mxu0 %v1359_v24  ;;  %1105 = vmatpush3.xpose.msra.mxu1 %v338_v44  ;;  %v359_v3 = vand.u32 4294901760, %v358_v58  ;;  %v1439_v10 = vand.u32 4294901760, %v221_v1  ;;  %v378_v11 = vand.u32 4294901760, %v1424_v2  ;;  %v203_v15 = vsub.f32 %v171_v7, %v187_v8 }
  0x1f   : > { %1075 = vmatprep.subr.mxu0 %v1298_v0  ;;  %1106 = vmatprep.subr.mxu1 %v1298_v0  ;;  %v366_v12 = vand.u32 4294901760, %v365_v4  ;;  %v220_v13 = vmul.f32 %v204_v6, %v204_v6  ;;  %v1444_v14 = vsub.f32 %v222_v60, %v1430_v5  ;;  %v230_v18 = vlaneseq  ;;  %v183_v4 = vld [vmem:[%s1341_s18 + $0x8] sm:$0xff] }
  0x20   : > { %v373_v19 = vand.u32 4294901760, %v372_v9  ;;  %v379_v20 = vsub.f32 %v1424_v2, %v378_v11  ;;  %v1454_v22 = vsub.f32 %v221_v1, %v1439_v10  ;;  %v219_v29 = vmul.f32 %v203_v15, %v203_v15 }
  0x21   : > { %v1457_v25 = vand.u32 4294901760, %v220_v13  ;;  %v385_v28 = vand.u32 4294901760, %v1444_v14  ;;  %v202_v30 = vsub.f32 %v170_v16, %v186_v17  ;;  %v233_v37 = vshrl.u32 %v230_v18, 7 }
  0x22   : > { %1076 = vmatpush3.xpose.msra.mxu0 %v1365_v27  ;;  %1107 = vmatpush3.xpose.msra.mxu1 %v345_v48  ;;  %v380_v41 = vand.u32 4294901760, %v379_v20  ;;  %v392_v42 = vand.u32 4294901760, %v1454_v22  ;;  %v201_v43 = vsub.f32 %v169_v35, %v185_v36  ;;  %v1469_v46 = vand.u32 4294901760, %v219_v29  ;;  %v182_v20 = vld [vmem:[%s1341_s18] sm:$0xff] }
  0x23   : > { %1077 = vmatprep.subr.mxu0 %v1298_v0  ;;  %1108 = vmatprep.subr.mxu1 %v1298_v0  ;;  %v386_v44 = vsub.f32 %v1444_v14, %v385_v28  ;;  %v218_v47 = vmul.f32 %v202_v30, %v202_v30  ;;  %v1472_v48 = vsub.f32 %v220_v13, %v1457_v25  ;;  %v236_v53 = vadd.s32 1, %v233_v37 }
  0x24   : > { %v393_v56 = vsub.f32 %v1454_v22, %v392_v42  ;;  %v200_v58 = vsub.f32 %v168_v49, %v184_v52  ;;  %v1486_v1 = vsub.f32 %v219_v29, %v1469_v46  ;;  %v231_v6 = vand.u32 127, %v230_v18  ;;  %v166_v18 = vld [vmem:[%s1336_s15] sm:$0xff] }
  0x25   : > { %v387_v60 = vand.u32 4294901760, %v386_v44  ;;  %v1482_v61 = vand.u32 4294901760, %v218_v47  ;;  %v399_v62 = vand.u32 4294901760, %v1472_v48  ;;  %v234_v7 = vmul.u32 32, %v233_v37 }
  0x26   : > { %1078 = vmatpush3.xpose.msra.mxu0 %v1382_v38  ;;  %1109 = vmatpush3.xpose.msra.mxu1 %v352_v57  ;;  %v217_v57 = vmul.f32 %v201_v43, %v201_v43  ;;  %v237_v8 = vmul.u32 32, %v236_v53  ;;  %v394_v15 = vand.u32 4294901760, %v393_v56  ;;  %v406_v17 = vand.u32 4294901760, %v1486_v1 }
  0x27   : > { %1079 = vmatprep.subr.mxu0 %v1298_v0  ;;  %1110 = vmatprep.subr.mxu1 %v1298_v0  ;;  %v400_v16 = vsub.f32 %v1472_v48, %v399_v62  ;;  %vm235_vm1 = vcmp.ge.s32.totalorder %v231_v6, %v234_v7  ;;  %v198_v43 = vsub.f32 %v166_v18, %v182_v20 }
  0x28   : > { %v1492_v9 = vand.u32 4294901760, %v217_v57  ;;  %vm238_vm2 = vcmp.lt.s32.totalorder %v231_v6, %v237_v8  ;;  %v407_v37 = vsub.f32 %v1486_v1, %v406_v17 }
  0x29   : > { %v401_v36 = vand.u32 4294901760, %v400_v16  ;;  %vm1516_vm3 = vmand %vm235_vm1, %vm238_vm2 }
  0x2a   : > { %1080 = vmatpush3.xpose.msra.mxu0 %v1394_v45  ;;  %1111 = vmatpush3.xpose.msra.mxu1 %v359_v3  ;;  %v167_v3 = vld [vmem:[%s1336_s15 + $0x8] sm:$0xff]  ;;  %v1509_v35 = vsub.f32 %v217_v57, %v1492_v9  ;;  %v961_v52 = vsel %vm1516_vm3, 1.0, %v1298_v0  ;;  %v408_v53 = vand.u32 4294901760, %v407_v37 }
  0x2b   : > { %1081 = vmatprep.subr.mxu0 %v1298_v0  ;;  %1112 = vmatprep.subr.mxu1 %v1298_v0  ;;  %v199_v13 = vsub.f32 %v167_v3, %v183_v4  ;;  %v1538_v3 = vsub.f32 %v961_v52, %v961_v52 }
  0x2c   : > { %v420_v57 = vand.u32 4294901760, %v1509_v35 }
  0x2d   : > { %v215_v30 = vmul.f32 %v199_v13, %v199_v13 }
  0x2e   : > { %1082 = vmatpush3.xpose.msra.mxu0 %v1408_v54  ;;  %1113 = vmatpush3.xpose.msra.mxu1 %v366_v12  ;;  %v216_v12 = vmul.f32 %v200_v58, %v200_v58  ;;  %v214_v58 = vmul.f32 %v198_v43, %v198_v43  ;;  %v421_v6 = vsub.f32 %v1509_v35, %v420_v57 }
  0x2f   : > { %1083 = vmatprep.subr.mxu0 %v1298_v0  ;;  %1114 = vmatprep.subr.mxu1 %v1298_v0 }
  0x30   : > { %v1506_v29 = vand.u32 4294901760, %v216_v12  ;;  %v1544_v7 = vand.u32 4294901760, %v214_v58  ;;  %v422_v13 = vand.u32 4294901760, %v421_v6 }
  0x32   : > { %1084 = vmatpush3.xpose.msra.mxu0 %v1430_v5  ;;  %1115 = vmatpush3.xpose.msra.mxu1 %v373_v19  ;;  %v1500_v19 = vsub.f32 %v218_v47, %v1482_v61  ;;  %v1522_v47 = vand.u32 4294901760, %v215_v30  ;;  %v1525_v49 = vsub.f32 %v216_v12, %v1506_v29  ;;  %v325_v12 = vand.u32 4294901760, %v1538_v3 }
  0x33   : > { %1085 = vmatprep.subr.mxu0 %v1298_v0  ;;  %1116 = vmatprep.subr.mxu1 %v1298_v0  ;;  %v1558_v18 = vsub.f32 %v214_v58, %v1544_v7  ;;  %v1300_v58 = vmov 1.0  }
  0x34   : > { %v1547_v8 = vsub.f32 %v215_v30, %v1522_v47  ;;  %v326_v20 = vsub.f32 %v1538_v3, %v325_v12 }
  0x35   : > { %v441_v37 = vand.u32 4294901760, %v1558_v18 }
  0x36   : > { %1086 = vmatpush3.xpose.msra.mxu0 %v1439_v10  ;;  %1117 = vmatpush3.xpose.msra.mxu1 %v380_v41  ;;  %v413_v41 = vand.u32 4294901760, %v1500_v19  ;;  %v434_v16 = vand.u32 4294901760, %v1547_v8  ;;  %v327_v43 = vand.u32 4294901760, %v326_v20 }
  0x37   : > { %1087 = vmatprep.subr.mxu0 %v1298_v0  ;;  %1118 = vmatprep.subr.mxu1 %v1298_v0 }
  0x38   : > { %v414_v56 = vsub.f32 %v1500_v19, %v413_v41 }
  0x3a   : > { %1088 = vmatpush3.xpose.msra.mxu0 %v1457_v25  ;;  %1119 = vmatpush3.xpose.msra.mxu1 %v387_v60  ;;  %v427_v60 = vand.u32 4294901760, %v1525_v49  ;;  %v415_v4 = vand.u32 4294901760, %v414_v56 }
  0x3b   : > { %1089 = vmatprep.subr.mxu0 %v1298_v0  ;;  %1120 = vmatprep.subr.mxu1 %v1298_v0 }
  0x3e   : > { %1090 = vmatpush3.xpose.msra.mxu0 %v1469_v46  ;;  %1121 = vmatpush3.xpose.msra.mxu1 %v394_v15  ;;  %v428_v15 = vsub.f32 %v1525_v49, %v427_v60 }
  0x3f   : > { %1091 = vmatprep.subr.mxu0 %v1298_v0  ;;  %1122 = vmatprep.subr.mxu1 %v1298_v0 }
  0x40   : > { %v429_v30 = vand.u32 4294901760, %v428_v15 }
  0x42   : > { %1092 = vmatpush3.xpose.msra.mxu0 %v1482_v61  ;;  %1123 = vmatpush3.xpose.msra.mxu1 %v401_v36  ;;  %v435_v36 = vsub.f32 %v1547_v8, %v434_v16 }
  0x43   : > { %1093 = vmatprep.subr.mxu0 %v1298_v0  ;;  %1124 = vmatprep.subr.mxu1 %v1298_v0 }
  0x44   : > { %v436_v52 = vand.u32 4294901760, %v435_v36 }
  0x46   : > { %1094 = vmatpush3.xpose.msra.mxu0 %v1492_v9  ;;  %1125 = vmatpush3.xpose.msra.mxu1 %v408_v53  ;;  %v442_v53 = vsub.f32 %v1558_v18, %v441_v37 }
  0x47   : > { %1095 = vmatprep.subr.mxu0 %v1298_v0  ;;  %1126 = vmatprep.subr.mxu1 %v1298_v0 }
  0x48   : > { %v443_v56 = vand.u32 4294901760, %v442_v53 }
  0x4a   : > { %1096 = vmatpush3.xpose.msra.mxu0 %v1506_v29  ;;  %1127 = vmatpush3.xpose.msra.mxu1 %v415_v4 }
  0x4b   : > { %1097 = vmatprep.subr.mxu0 %v1298_v0  ;;  %1128 = vmatprep.subr.mxu1 %v1298_v0 }
  0x4e   : > { %1098 = vmatpush3.xpose.msra.mxu0 %v1522_v47  ;;  %1129 = vmatpush3.xpose.msra.mxu1 %v422_v13 }
  0x4f   : > { %1099 = vmatprep.subr.mxu0 %v1298_v0  ;;  %1130 = vmatprep.subr.mxu1 %v1298_v0 }
  0x52   : > { %1100 = vmatpush3.xpose.msra.mxu0 %v1544_v7  ;;  %1131 = vmatpush3.xpose.msra.mxu1 %v429_v30 }
  0x53   : > { %1132 = vmatprep.subr.mxu1 %v1298_v0  ;;  %1139 = vmatprep.subr.mxu0 %v1298_v0 }
  0x55   : > { %1102 = vmatmul.mubr.f32.vlgmr.msra.gmra.mxu0 %v327_v43 }
  0x56   : > { %1133 = vmatpush3.xpose.msra.mxu1 %v436_v52  ;;  %1140 = vmatpush3.xpose.msra.mxu0 %v1363_v26 }
  0x57   : > { %1134 = vmatprep.subr.mxu1 %v1298_v0  ;;  %1141 = vmatprep.subr.mxu0 %v1298_v0 }
  0x58   : > { %1171 = vmatprep.mubr.msk.f32.mxu0 %vm1299_vm0, %v1298_v0 }
  0x5a   : > { %1135 = vmatpush3.xpose.msra.mxu1 %v443_v56  ;;  %1142 = vmatpush3.xpose.msra.mxu0 %v1371_v31 }
  0x5b   : > { %1143 = vmatprep.subr.mxu0 %v1298_v0  ;;  %1174 = vmatprep.subr.mxu1 %v1298_v0 }
  0x5d   : > { %1137 = vmatmul.mubr.msk.f32.vlgmr.msra.gmra.mxu1 %vm1516_vm3, %v1300_v58 }
  0x5e   : > { %1144 = vmatpush3.xpose.msra.mxu0 %v1374_v32  ;;  %1175 = vmatpush3.xpose.msra.mxu1 %v1355_v21 }
  0x5f   : > { %1145 = vmatprep.subr.mxu0 %v1298_v0  ;;  %1176 = vmatprep.subr.mxu1 %v1298_v0 }
  0x60   : > { %1206 = vmatprep.mubr.msk.f32.mxu1 %vm1299_vm0, %v1298_v0 }
  0x62   : > { %1146 = vmatpush3.xpose.msra.mxu0 %v1386_v40  ;;  %1177 = vmatpush3.xpose.msra.mxu1 %v1357_v23 }
  0x63   : > { %1147 = vmatprep.subr.mxu0 %v1298_v0  ;;  %1178 = vmatprep.subr.mxu1 %v1298_v0 }
  0x66   : > { %1148 = vmatpush3.xpose.msra.mxu0 %v1402_v51  ;;  %1179 = vmatpush3.xpose.msra.mxu1 %v1359_v24 }
  0x67   : > { %1149 = vmatprep.subr.mxu0 %v1298_v0  ;;  %1180 = vmatprep.subr.mxu1 %v1298_v0 }
  0x6a   : > { %1150 = vmatpush3.xpose.msra.mxu0 %v1411_v55  ;;  %1181 = vmatpush3.xpose.msra.mxu1 %v1365_v27 }
  0x6b   : > { %1151 = vmatprep.subr.mxu0 %v1298_v0  ;;  %1182 = vmatprep.subr.mxu1 %v1298_v0 }
  0x6e   : > { %1152 = vmatpush3.xpose.msra.mxu0 %v1424_v2  ;;  %1183 = vmatpush3.xpose.msra.mxu1 %v1382_v38 }
  0x6f   : > { %1153 = vmatprep.subr.mxu0 %v1298_v0  ;;  %1184 = vmatprep.subr.mxu1 %v1298_v0 }
  0x72   : > { %1154 = vmatpush3.xpose.msra.mxu0 %v1444_v14  ;;  %1185 = vmatpush3.xpose.msra.mxu1 %v1394_v45 }
  0x73   : > { %1155 = vmatprep.subr.mxu0 %v1298_v0  ;;  %1186 = vmatprep.subr.mxu1 %v1298_v0 }
  0x76   : > { %1156 = vmatpush3.xpose.msra.mxu0 %v1454_v22  ;;  %1187 = vmatpush3.xpose.msra.mxu1 %v1408_v54 }
  0x77   : > { %1157 = vmatprep.subr.mxu0 %v1298_v0  ;;  %1188 = vmatprep.subr.mxu1 %v1298_v0 }
  0x7a   : > { %1158 = vmatpush3.xpose.msra.mxu0 %v1472_v48  ;;  %1189 = vmatpush3.xpose.msra.mxu1 %v1430_v5 }
  0x7b   : > { %1159 = vmatprep.subr.mxu0 %v1298_v0  ;;  %1190 = vmatprep.subr.mxu1 %v1298_v0 }
  0x7e   : > { %1160 = vmatpush3.xpose.msra.mxu0 %v1486_v1  ;;  %1191 = vmatpush3.xpose.msra.mxu1 %v1439_v10 }
  0x7f   : > { %1161 = vmatprep.subr.mxu0 %v1298_v0  ;;  %1192 = vmatprep.subr.mxu1 %v1298_v0 }
  0x82   : > { %1162 = vmatpush3.xpose.msra.mxu0 %v1500_v19  ;;  %1193 = vmatpush3.xpose.msra.mxu1 %v1457_v25 }
  0x83   : > { %1163 = vmatprep.subr.mxu0 %v1298_v0  ;;  %1194 = vmatprep.subr.mxu1 %v1298_v0 }
  0x86   : > { %1164 = vmatpush3.xpose.msra.mxu0 %v1509_v35  ;;  %1195 = vmatpush3.xpose.msra.mxu1 %v1469_v46 }
  0x87   : > { %1165 = vmatprep.subr.mxu0 %v1298_v0  ;;  %1196 = vmatprep.subr.mxu1 %v1298_v0 }
  0x8a   : > { %1166 = vmatpush3.xpose.msra.mxu0 %v1525_v49  ;;  %1197 = vmatpush3.xpose.msra.mxu1 %v1482_v61 }
  0x8b   : > { %1167 = vmatprep.subr.mxu0 %v1298_v0  ;;  %1198 = vmatprep.subr.mxu1 %v1298_v0 }
  0x8e   : > { %1168 = vmatpush3.xpose.msra.mxu0 %v1547_v8  ;;  %1199 = vmatpush3.xpose.msra.mxu1 %v1492_v9 }
  0x8f   : > { %1169 = vmatprep.subr.mxu0 %v1298_v0  ;;  %1200 = vmatprep.subr.mxu1 %v1298_v0 }
  0x92   : > { %1170 = vmatpush3.xpose.msra.mxu0 %v1558_v18  ;;  %1201 = vmatpush3.xpose.msra.mxu1 %v1506_v29 }
  0x93   : > { %1202 = vmatprep.subr.mxu1 %v1298_v0  ;;  %1209 = vmatprep.subr.mxu0 %v1298_v0 }
  0x95   : > { %1172 = vmatmul.mubr.f32.vlgmr.msra.gmra.mxu0 %v1538_v3 }
  0x96   : > { %1203 = vmatpush3.xpose.msra.mxu1 %v1522_v47  ;;  %1210 = vmatpush3.xpose.msra.mxu0 %v336_v33 }
  0x97   : > { %1204 = vmatprep.subr.mxu1 %v1298_v0  ;;  %1211 = vmatprep.subr.mxu0 %v1298_v0 }
  0x98   : > { %1241 = vmatprep.mubr.msk.f32.mxu0 %vm1299_vm0, %v1298_v0 }
  0x9a   : > { %1205 = vmatpush3.xpose.msra.mxu1 %v1544_v7  ;;  %1212 = vmatpush3.xpose.msra.mxu0 %v343_v34 }
  0x9b   : > { %1213 = vmatprep.subr.mxu0 %v1298_v0  ;;  %1244 = vmatprep.subr.mxu1 %v1298_v0 }
  0x9d   : > { %1207 = vmatmul.mubr.f32.vlgmr.msra.gmra.mxu1 %v325_v12 }
  0x9e   : > { %1214 = vmatpush3.xpose.msra.mxu0 %v350_v39  ;;  %1245 = vmatpush3.xpose.msra.mxu1 %v1355_v21 }
  0x9f   : > { %1215 = vmatprep.subr.mxu0 %v1298_v0  ;;  %1246 = vmatprep.subr.mxu1 %v1298_v0 }
  0xa0   : > { %1276 = vmatprep.mubr.msk.f32.mxu1 %vm1299_vm0, %v1298_v0 }
  0xa2   : > { %1216 = vmatpush3.xpose.msra.mxu0 %v357_v50  ;;  %1247 = vmatpush3.xpose.msra.mxu1 %v1357_v23 }
  0xa3   : > { %1217 = vmatprep.subr.mxu0 %v1298_v0  ;;  %1248 = vmatprep.subr.mxu1 %v1298_v0 }
  0xa6   : > { %1218 = vmatpush3.xpose.msra.mxu0 %v364_v59  ;;  %1249 = vmatpush3.xpose.msra.mxu1 %v1359_v24 }
  0xa7   : > { %1219 = vmatprep.subr.mxu0 %v1298_v0  ;;  %1250 = vmatprep.subr.mxu1 %v1298_v0 }
  0xaa   : > { %1220 = vmatpush3.xpose.msra.mxu0 %v371_v63  ;;  %1251 = vmatpush3.xpose.msra.mxu1 %v1365_v27 }
  0xab   : > { %1221 = vmatprep.subr.mxu0 %v1298_v0  ;;  %1252 = vmatprep.subr.mxu1 %v1298_v0 }
  0xae   : > { %1222 = vmatpush3.xpose.msra.mxu0 %v378_v11  ;;  %1253 = vmatpush3.xpose.msra.mxu1 %v1382_v38 }
  0xaf   : > { %1223 = vmatprep.subr.mxu0 %v1298_v0  ;;  %1254 = vmatprep.subr.mxu1 %v1298_v0 }
  0xb2   : > { %1224 = vmatpush3.xpose.msra.mxu0 %v385_v28  ;;  %1255 = vmatpush3.xpose.msra.mxu1 %v1394_v45 }
  0xb3   : > { %1225 = vmatprep.subr.mxu0 %v1298_v0  ;;  %1256 = vmatprep.subr.mxu1 %v1298_v0 }
  0xb6   : > { %1226 = vmatpush3.xpose.msra.mxu0 %v392_v42  ;;  %1257 = vmatpush3.xpose.msra.mxu1 %v1408_v54 }
  0xb7   : > { %1227 = vmatprep.subr.mxu0 %v1298_v0  ;;  %1258 = vmatprep.subr.mxu1 %v1298_v0 }
  0xba   : > { %1228 = vmatpush3.xpose.msra.mxu0 %v399_v62  ;;  %1259 = vmatpush3.xpose.msra.mxu1 %v1430_v5 }
  0xbb   : > { %1229 = vmatprep.subr.mxu0 %v1298_v0  ;;  %1260 = vmatprep.subr.mxu1 %v1298_v0 }
  0xbe   : > { %1230 = vmatpush3.xpose.msra.mxu0 %v406_v17  ;;  %1261 = vmatpush3.xpose.msra.mxu1 %v1439_v10 }
  0xbf   : > { %1231 = vmatprep.subr.mxu0 %v1298_v0  ;;  %1262 = vmatprep.subr.mxu1 %v1298_v0 }
  0xc2   : > { %1232 = vmatpush3.xpose.msra.mxu0 %v413_v41  ;;  %1263 = vmatpush3.xpose.msra.mxu1 %v1457_v25 }
  0xc3   : > { %1233 = vmatprep.subr.mxu0 %v1298_v0  ;;  %1264 = vmatprep.subr.mxu1 %v1298_v0 }
  0xc6   : > { %1234 = vmatpush3.xpose.msra.mxu0 %v420_v57  ;;  %1265 = vmatpush3.xpose.msra.mxu1 %v1469_v46 }
  0xc7   : > { %1235 = vmatprep.subr.mxu0 %v1298_v0  ;;  %1266 = vmatprep.subr.mxu1 %v1298_v0 }
  0xca   : > { %1236 = vmatpush3.xpose.msra.mxu0 %v427_v60  ;;  %1267 = vmatpush3.xpose.msra.mxu1 %v1482_v61 }
  0xcb   : > { %1237 = vmatprep.subr.mxu0 %v1298_v0  ;;  %1268 = vmatprep.subr.mxu1 %v1298_v0 }
  0xce   : > { %1238 = vmatpush3.xpose.msra.mxu0 %v434_v16  ;;  %1269 = vmatpush3.xpose.msra.mxu1 %v1492_v9 }
  0xcf   : > { %1239 = vmatprep.subr.mxu0 %v1298_v0  ;;  %1270 = vmatprep.subr.mxu1 %v1298_v0 }
  0xd2   : > { %1240 = vmatpush3.xpose.msra.mxu0 %v441_v37  ;;  %1271 = vmatpush3.xpose.msra.mxu1 %v1506_v29 }
  0xd3   : > { %1272 = vmatprep.subr.mxu1 %v1298_v0 }
  0xd5   : > { %1242 = vmatmul.mubr.msk.f32.vlgmr.msra.gmra.mxu0 %vm1516_vm3, %v1300_v58 }
  0xd6   : > { %1273 = vmatpush3.xpose.msra.mxu1 %v1522_v47 }
  0xd7   : > { %1274 = vmatprep.subr.mxu1 %v1298_v0 }
  0xda   : > { %1275 = vmatpush3.xpose.msra.mxu1 %v1544_v7 }
  0xdd   : > { %1277 = vmatmul.mubr.msk.f32.vlgmr.msra.gmra.mxu1 %vm1516_vm3, %v1300_v58 }
 0x115   : > { %v329_v21 = vpop.f32.mrf.mxu0 }
 0x117   : > { %v1103_v23 = vpop.f32.mrf.mxu0 }
 0x11d   : > { %v480_v24 = vpop.f32.mrf.mxu1 }
 0x11e   : > { %v481_v26 = vadd.f32 %v480_v24, %v329_v21 }
 0x11f   : > { %v1138_v27 = vpop.f32.mrf.mxu1 }
 0x155   : > { %v584_v31 = vpop.f32.mrf.mxu0 }
 0x156   : > { %v585_v32 = vadd.f32 %v584_v31, %v481_v26 }
 0x157   : > { %v1173_v33 = vpop.f32.mrf.mxu0 }
 0x15d   : > { %v673_v34 = vpop.f32.mrf.mxu1 }
 0x15e   : > { %v674_v40 = vadd.f32 %v673_v34, %v585_v32 }
 0x15f   : > { %v1208_v38 = vpop.f32.mrf.mxu1 }
 0x195   : > { %v792_v39 = vpop.f32.mrf.mxu0 }
 0x196   : > { %v793_v45 = vadd.f32 %v792_v39, %v674_v40 }
 0x197   : > { %v1243_v0 = vpop.f32.mrf.mxu0 }
 0x19d   : > { %v879_v50 = vpop.f32.mrf.mxu1 }
 0x19e   : > { %v880_v51 = vadd.f32 %v879_v50, %v793_v45 }
 0x19f   : > { %v1278_v54 = vpop.f32.mrf.mxu1 }
 0x1a0   : > { %v883_v55 = vmul.f32 0.5, %v880_v51 }
 0x1a2   : > { %v884_v59 = vadd.f32 29.406033, %v883_v55 }
 0x1a4   : > { %885 = vst [vmem:[%s165_s22] sm:$0xf] %v884_v59 }
 0x1a5 PF: > { %s12_s9 = sadd.s32 1, %s1296_s9  }
 0x1a6   : > { %p9_p5 = scmp.ge.s32.totalorder %s12_s9, 6  }
 0x1a8   :  { %11 = sbr.rel (!%p9_p5) target bundleno = 1 (0x1), region = 61 }

</bundles_post_ra>
